<compile_context>
chip_gen: v7x
topology: tpu7x:2x2x1
jax: 0.10.0
libtpu: 0.0.40
codegen_flags: <defaults>
</compile_context>

<pallas_src>
import math
from functools import partial

import jax
import jax.numpy as jnp
from jax import lax
from jax.experimental import pallas as pl
from jax.experimental.pallas import tpu as pltpu

EPS = 1e-5  # nn.LayerNorm default eps


def _layernorm(x, gamma, beta):
    # PyTorch LayerNorm: biased variance over last dim.
    mean = jnp.mean(x, axis=-1, keepdims=True)
    var = jnp.mean((x - mean) ** 2, axis=-1, keepdims=True)
    return (x - mean) * lax.rsqrt(var + EPS) * gamma + beta


# --------------------------------------------------------------------------
# Fused encoder-block kernel (grid over batch)
# --------------------------------------------------------------------------
def encoder_kernel(x_ref, g1_ref, bln1_ref, wqkv_ref, bqkv_ref,
                   wo_ref, bo_ref, g2_ref, bln2_ref,
                   w1_ref, b1_ref, w2_ref, b2_ref, o_ref, *, num_heads):
    f32 = jnp.float32
    bf16 = jnp.bfloat16

    x = x_ref[0]                                   # (S, D) f32 residual
    D = x.shape[-1]
    dh = D // num_heads
    scale = 1.0 / math.sqrt(dh)

    # ---- LN1 + fused QKV projection (bf16 MXU inputs, f32 accumulation) ----
    xn = _layernorm(x, g1_ref[...], bln1_ref[...])
    qkv = jnp.dot(xn.astype(bf16), wqkv_ref[...],
                  preferred_element_type=f32) + bqkv_ref[...]        # (S, 3D)

    # ---- multi-head attention: heads sliced in-kernel, output merged to D --
    head_outs = []
    for h in range(num_heads):                     # static unroll over heads
        lo = h * dh
        q = (qkv[:, lo:lo + dh] * scale).astype(bf16)                # (S, dh)
        k = qkv[:, D + lo:D + lo + dh].astype(bf16)
        v = qkv[:, 2 * D + lo:2 * D + lo + dh].astype(bf16)
        # q @ k^T by contracting last dims (no explicit transpose of k)
        s = lax.dot_general(q, k, (((1,), (1,)), ((), ())),
                            preferred_element_type=f32)              # (S, S)
        m = jnp.max(s, axis=-1, keepdims=True)
        p = jnp.exp(s - m)
        l = jnp.sum(p, axis=-1, keepdims=True)                       # (S, 1)
        o_h = jnp.dot(p.astype(bf16), v, preferred_element_type=f32)  # (S, dh)
        # normalize after PV (S*dh work, not S*S) with EUP approx reciprocal
        head_outs.append(o_h * pl.reciprocal(l, approx=True))
    attn = jnp.concatenate(head_outs, axis=-1)                       # (S, D)

    # ---- attention output projection + residual ----------------------------
    x2 = (jnp.dot(attn.astype(bf16), wo_ref[...], preferred_element_type=f32)
          + bo_ref[...] + x)

    # ---- LN2 + FF (Linear -> GELU -> Linear) + residual ---------------------
    xn2 = _layernorm(x2, g2_ref[...], bln2_ref[...])
    h1 = (jnp.dot(xn2.astype(bf16), w1_ref[...], preferred_element_type=f32)
          + b1_ref[...])
    # exact GELU (nn.GELU default): 0.5 * x * (1 + erf(x / sqrt(2)))
    h1 = 0.5 * h1 * (1.0 + lax.erf(h1 * (1.0 / math.sqrt(2.0))))
    ff = (jnp.dot(h1.astype(bf16), w2_ref[...], preferred_element_type=f32)
          + b2_ref[...])
    # Dropout layers are identity in eval mode.
    o_ref[0] = (x2 + ff).astype(o_ref.dtype)


# --------------------------------------------------------------------------
# Wrapper
# --------------------------------------------------------------------------
def transformer_encoder(x, params):
    B, S, D = x.shape
    H = params["num_heads"]
    F = params["w1"].shape[1]
    f32 = jnp.float32
    bf16 = jnp.bfloat16

    # Matmul weights in bf16 (MXU inputs); biases / LN params stay f32.
    wqkv = params["wqkv"].astype(bf16)
    wo = params["wo"].astype(bf16)
    w1 = params["w1"].astype(bf16)
    w2 = params["w2"].astype(bf16)

    def full(shape):
        return pl.BlockSpec(shape, lambda b, _n=len(shape): (0,) * _n)

    # TODO(synk): for real ViT scale (large S, F), tile S with an extra grid
    # axis of (1, tS, D) blocks and tile the FF hidden dim F with an
    # accumulator scratch instead of loading full (D,F)/(F,D) weight slabs.
    return pl.pallas_call(
        partial(encoder_kernel, num_heads=H),
        out_shape=jax.ShapeDtypeStruct((B, S, D), f32),
        grid=(B,),
        in_specs=[
            pl.BlockSpec((1, S, D), lambda b: (b, 0, 0)),   # x (residual)
            full((1, D)),                                   # LN1 gamma
            full((1, D)),                                   # LN1 beta
            full((D, 3 * D)),                               # wqkv (bf16)
            full((1, 3 * D)),                               # bqkv
            full((D, D)),                                   # wo (bf16)
            full((1, D)),                                   # bo
            full((1, D)),                                   # LN2 gamma
            full((1, D)),                                   # LN2 beta
            full((D, F)),                                   # w1 (bf16)
            full((1, F)),                                   # b1
            full((F, D)),                                   # w2 (bf16)
            full((1, D)),                                   # b2
        ],
        out_specs=pl.BlockSpec((1, S, D), lambda b: (b, 0, 0)),
        compiler_params=pltpu.CompilerParams(
            dimension_semantics=("parallel",),
            vmem_limit_bytes=48 * 1024 * 1024,
        ),
    )(x, params["g1"], params["bln1"], wqkv, params["bqkv"],
      wo, params["bo"], params["g2"], params["bln2"],
      w1, params["b1"], w2, params["b2"])


# --------------------------------------------------------------------------
# Pure-JAX f32 reference (same math as the PyTorch module) for a check
# --------------------------------------------------------------------------
def reference(x, p):
    B, S, D = x.shape
    H = p["num_heads"]
    dh = D // H

    def ln(t, g, b):
        mean = jnp.mean(t, axis=-1, keepdims=True)
        var = jnp.mean((t - mean) ** 2, axis=-1, keepdims=True)
        return (t - mean) / jnp.sqrt(var + EPS) * g + b

    xn = ln(x, p["g1"], p["bln1"])
    qkv = xn @ p["wqkv"] + p["bqkv"]
    q, k, v = jnp.split(qkv, 3, axis=-1)
    q = jnp.transpose(q.reshape(B, S, H, dh), (0, 2, 1, 3))
    k = jnp.transpose(k.reshape(B, S, H, dh), (0, 2, 1, 3))
    v = jnp.transpose(v.reshape(B, S, H, dh), (0, 2, 1, 3))
    s = jnp.einsum("bhqd,bhkd->bhqk", q, k) / math.sqrt(dh)
    a = jax.nn.softmax(s, axis=-1)
    o = jnp.einsum("bhqk,bhkd->bhqd", a, v)
    o = jnp.transpose(o, (0, 2, 1, 3)).reshape(B, S, D)
    x2 = x + o @ p["wo"] + p["bo"]
    xn2 = ln(x2, p["g2"], p["bln2"])
    h = xn2 @ p["w1"] + p["b1"]
    h = 0.5 * h * (1.0 + lax.erf(h / math.sqrt(2.0)))
    return x2 + h @ p["w2"] + p["b2"]


if __name__ == "__main__":
    B, S, D, H, FF = 2, 8, 32, 4, 64
    f32 = jnp.float32
    key = jax.random.PRNGKey(0)
    k_x, k_qkv, k_o, k_1, k_2 = jax.random.split(key, 5)

    params = {
        "num_heads": H,
        "g1": jnp.ones((1, D), f32),
        "bln1": jnp.zeros((1, D), f32),
        "wqkv": 0.02 * jax.random.normal(k_qkv, (D, 3 * D), f32),
        "bqkv": jnp.zeros((1, 3 * D), f32),
        "wo": 0.02 * jax.random.normal(k_o, (D, D), f32),
        "bo": jnp.zeros((1, D), f32),
        "g2": jnp.ones((1, D), f32),
        "bln2": jnp.zeros((1, D), f32),
        "w1": 0.02 * jax.random.normal(k_1, (D, FF), f32),
        "b1": jnp.zeros((1, FF), f32),
        "w2": 0.02 * jax.random.normal(k_2, (FF, D), f32),
        "b2": jnp.zeros((1, D), f32),
    }

    x = jax.random.normal(k_x, (B, S, D), f32)

    out = transformer_encoder(x, params)
    out = jax.block_until_ready(out)

    ref = reference(x, params)
    assert out.shape == (B, S, D)
    max_err = float(jnp.max(jnp.abs(out - ref)))
    # bf16 MXU inputs + approx reciprocal loosen the tolerance vs f32 reference
    assert jnp.allclose(out, ref, atol=2e-2, rtol=2e-2), (
        f"mismatch vs reference (max abs err {max_err})")
    print("KERNEL_OK")
</pallas_src>

<mosaic_0001>
module attributes {stable_mosaic.version = 11 : i64} {
  func.func @encoder_kernel(%arg0: i32, %arg1: memref<1x8x32xf32, #tpu.memory_space<vmem>>, %arg2: memref<1x32xf32, #tpu.memory_space<vmem>>, %arg3: memref<1x32xf32, #tpu.memory_space<vmem>>, %arg4: memref<32x96xbf16, #tpu.memory_space<vmem>>, %arg5: memref<1x96xf32, #tpu.memory_space<vmem>>, %arg6: memref<32x32xbf16, #tpu.memory_space<vmem>>, %arg7: memref<1x32xf32, #tpu.memory_space<vmem>>, %arg8: memref<1x32xf32, #tpu.memory_space<vmem>>, %arg9: memref<1x32xf32, #tpu.memory_space<vmem>>, %arg10: memref<32x64xbf16, #tpu.memory_space<vmem>>, %arg11: memref<1x64xf32, #tpu.memory_space<vmem>>, %arg12: memref<64x32xbf16, #tpu.memory_space<vmem>>, %arg13: memref<1x32xf32, #tpu.memory_space<vmem>>, %arg14: memref<1x8x32xf32, #tpu.memory_space<vmem>>) attributes {dimension_semantics = [#tpu.dimension_semantics<parallel>], iteration_bounds = array<i64: 2>, scalar_prefetch = 0 : i64, scratch_operands = 0 : i64, tpu.core_type = #tpu.core_type<tc>, window_params = [{transform_indices = @transform_0, window_bounds = array<i64: 1, 8, 32>}, {pipeline_mode = #tpu.pipeline_mode<synchronous>, transform_indices = @transform_1, window_bounds = array<i64: 1, 32>}, {pipeline_mode = #tpu.pipeline_mode<synchronous>, transform_indices = @transform_2, window_bounds = array<i64: 1, 32>}, {pipeline_mode = #tpu.pipeline_mode<synchronous>, transform_indices = @transform_3, window_bounds = array<i64: 32, 96>}, {pipeline_mode = #tpu.pipeline_mode<synchronous>, transform_indices = @transform_4, window_bounds = array<i64: 1, 96>}, {pipeline_mode = #tpu.pipeline_mode<synchronous>, transform_indices = @transform_5, window_bounds = array<i64: 32, 32>}, {pipeline_mode = #tpu.pipeline_mode<synchronous>, transform_indices = @transform_6, window_bounds = array<i64: 1, 32>}, {pipeline_mode = #tpu.pipeline_mode<synchronous>, transform_indices = @transform_7, window_bounds = array<i64: 1, 32>}, {pipeline_mode = #tpu.pipeline_mode<synchronous>, transform_indices = @transform_8, window_bounds = array<i64: 1, 32>}, {pipeline_mode = #tpu.pipeline_mode<synchronous>, transform_indices = @transform_9, window_bounds = array<i64: 32, 64>}, {pipeline_mode = #tpu.pipeline_mode<synchronous>, transform_indices = @transform_10, window_bounds = array<i64: 1, 64>}, {pipeline_mode = #tpu.pipeline_mode<synchronous>, transform_indices = @transform_11, window_bounds = array<i64: 64, 32>}, {pipeline_mode = #tpu.pipeline_mode<synchronous>, transform_indices = @transform_12, window_bounds = array<i64: 1, 32>}, {transform_indices = @transform_13, window_bounds = array<i64: 1, 8, 32>}]} {
    %c0 = arith.constant 0 : index
    %c0_0 = arith.constant 0 : index
    %c0_1 = arith.constant 0 : index
    %0 = vector.load %arg1[%c0, %c0_0, %c0_1] : memref<1x8x32xf32, #tpu.memory_space<vmem>>, vector<1x8x32xf32>
    %1 = vector.shape_cast %0 : vector<1x8x32xf32> to vector<8x32xf32>
    %c0_2 = arith.constant 0 : index
    %c0_3 = arith.constant 0 : index
    %2 = vector.load %arg2[%c0_2, %c0_3] : memref<1x32xf32, #tpu.memory_space<vmem>>, vector<1x32xf32>
    %c0_4 = arith.constant 0 : index
    %c0_5 = arith.constant 0 : index
    %3 = vector.load %arg3[%c0_4, %c0_5] : memref<1x32xf32, #tpu.memory_space<vmem>>, vector<1x32xf32>
    %cst = arith.constant dense<0.000000e+00> : vector<8xf32>
    %4 = vector.multi_reduction <add>, %1, %cst [1] : vector<8x32xf32> to vector<8xf32>
    %5 = vector.shape_cast %4 : vector<8xf32> to vector<8x1xf32>
    %cst_6 = arith.constant 3.200000e+01 : f32
    %6 = vector.broadcast %cst_6 : f32 to vector<8x1xf32>
    %7 = arith.divf %5, %6 : vector<8x1xf32>
    %8 = vector.broadcast %7 : vector<8x1xf32> to vector<8x32xf32>
    %9 = arith.subf %1, %8 : vector<8x32xf32>
    %10 = arith.mulf %9, %9 : vector<8x32xf32>
    %cst_7 = arith.constant dense<0.000000e+00> : vector<8xf32>
    %11 = vector.multi_reduction <add>, %10, %cst_7 [1] : vector<8x32xf32> to vector<8xf32>
    %12 = vector.shape_cast %11 : vector<8xf32> to vector<8x1xf32>
    %cst_8 = arith.constant 3.200000e+01 : f32
    %13 = vector.broadcast %cst_8 : f32 to vector<8x1xf32>
    %14 = arith.divf %12, %13 : vector<8x1xf32>
    %15 = vector.broadcast %7 : vector<8x1xf32> to vector<8x32xf32>
    %16 = arith.subf %1, %15 : vector<8x32xf32>
    %cst_9 = arith.constant 9.99999974E-6 : f32
    %17 = vector.broadcast %cst_9 : f32 to vector<8x1xf32>
    %18 = arith.addf %14, %17 : vector<8x1xf32>
    %19 = math.rsqrt %18 : vector<8x1xf32>
    %20 = vector.broadcast %19 : vector<8x1xf32> to vector<8x32xf32>
    %21 = arith.mulf %16, %20 : vector<8x32xf32>
    %22 = vector.broadcast %2 : vector<1x32xf32> to vector<8x32xf32>
    %23 = arith.mulf %21, %22 : vector<8x32xf32>
    %24 = vector.broadcast %3 : vector<1x32xf32> to vector<8x32xf32>
    %25 = arith.addf %23, %24 : vector<8x32xf32>
    %26 = arith.truncf %25 : vector<8x32xf32> to vector<8x32xbf16>
    %c0_10 = arith.constant 0 : index
    %c0_11 = arith.constant 0 : index
    %27 = vector.load %arg4[%c0_10, %c0_11] : memref<32x96xbf16, #tpu.memory_space<vmem>>, vector<32x96xbf16>
    %cst_12 = arith.constant dense<0.000000e+00> : vector<8x96xf32>
    %28 = tpu.matmul %26, %27, %cst_12 {dimension_numbers = #tpu.dot_dimension_numbers<[1], [0], [0], [1], [0, 0, 1, 1], [], []>} : vector<8x32xbf16>, vector<32x96xbf16>, vector<8x96xf32> -> vector<8x96xf32>
    %c0_13 = arith.constant 0 : index
    %c0_14 = arith.constant 0 : index
    %29 = vector.load %arg5[%c0_13, %c0_14] : memref<1x96xf32, #tpu.memory_space<vmem>>, vector<1x96xf32>
    %30 = vector.broadcast %29 : vector<1x96xf32> to vector<8x96xf32>
    %31 = arith.addf %28, %30 : vector<8x96xf32>
    %32 = vector.extract_strided_slice %31 {offsets = [0, 0], sizes = [8, 8], strides = [1, 1]} : vector<8x96xf32> to vector<8x8xf32>
    %cst_15 = arith.constant 0.353553385 : f32
    %33 = vector.broadcast %cst_15 : f32 to vector<8x8xf32>
    %34 = arith.mulf %32, %33 : vector<8x8xf32>
    %35 = arith.truncf %34 : vector<8x8xf32> to vector<8x8xbf16>
    %36 = vector.extract_strided_slice %31 {offsets = [0, 32], sizes = [8, 8], strides = [1, 1]} : vector<8x96xf32> to vector<8x8xf32>
    %37 = arith.truncf %36 : vector<8x8xf32> to vector<8x8xbf16>
    %38 = vector.extract_strided_slice %31 {offsets = [0, 64], sizes = [8, 8], strides = [1, 1]} : vector<8x96xf32> to vector<8x8xf32>
    %39 = arith.truncf %38 : vector<8x8xf32> to vector<8x8xbf16>
    %cst_16 = arith.constant dense<0.000000e+00> : vector<8x8xf32>
    %40 = tpu.matmul %35, %37, %cst_16 {dimension_numbers = #tpu.dot_dimension_numbers<[1], [1], [0], [0], [0, 0, 1, 0], [], []>} : vector<8x8xbf16>, vector<8x8xbf16>, vector<8x8xf32> -> vector<8x8xf32>
    %cst_17 = arith.constant dense<0xFF800000> : vector<8xf32>
    %41 = vector.multi_reduction <maximumf>, %40, %cst_17 [1] : vector<8x8xf32> to vector<8xf32>
    %42 = vector.shape_cast %41 : vector<8xf32> to vector<8x1xf32>
    %43 = vector.broadcast %42 : vector<8x1xf32> to vector<8x8xf32>
    %44 = arith.subf %40, %43 : vector<8x8xf32>
    %45 = math.exp %44 : vector<8x8xf32>
    %cst_18 = arith.constant dense<0.000000e+00> : vector<8xf32>
    %46 = vector.multi_reduction <add>, %45, %cst_18 [1] : vector<8x8xf32> to vector<8xf32>
    %47 = vector.shape_cast %46 : vector<8xf32> to vector<8x1xf32>
    %48 = arith.truncf %45 : vector<8x8xf32> to vector<8x8xbf16>
    %cst_19 = arith.constant dense<0.000000e+00> : vector<8x8xf32>
    %49 = tpu.matmul %48, %39, %cst_19 {dimension_numbers = #tpu.dot_dimension_numbers<[1], [0], [0], [1], [0, 0, 1, 1], [], []>} : vector<8x8xbf16>, vector<8x8xbf16>, vector<8x8xf32> -> vector<8x8xf32>
    %50 = tpu.reciprocal %47 {approx = true} : vector<8x1xf32> -> vector<8x1xf32>
    %51 = vector.broadcast %50 : vector<8x1xf32> to vector<8x8xf32>
    %52 = arith.mulf %49, %51 : vector<8x8xf32>
    %53 = vector.extract_strided_slice %31 {offsets = [0, 8], sizes = [8, 8], strides = [1, 1]} : vector<8x96xf32> to vector<8x8xf32>
    %cst_20 = arith.constant 0.353553385 : f32
    %54 = vector.broadcast %cst_20 : f32 to vector<8x8xf32>
    %55 = arith.mulf %53, %54 : vector<8x8xf32>
    %56 = arith.truncf %55 : vector<8x8xf32> to vector<8x8xbf16>
    %57 = vector.extract_strided_slice %31 {offsets = [0, 40], sizes = [8, 8], strides = [1, 1]} : vector<8x96xf32> to vector<8x8xf32>
    %58 = arith.truncf %57 : vector<8x8xf32> to vector<8x8xbf16>
    %59 = vector.extract_strided_slice %31 {offsets = [0, 72], sizes = [8, 8], strides = [1, 1]} : vector<8x96xf32> to vector<8x8xf32>
    %60 = arith.truncf %59 : vector<8x8xf32> to vector<8x8xbf16>
    %cst_21 = arith.constant dense<0.000000e+00> : vector<8x8xf32>
    %61 = tpu.matmul %56, %58, %cst_21 {dimension_numbers = #tpu.dot_dimension_numbers<[1], [1], [0], [0], [0, 0, 1, 0], [], []>} : vector<8x8xbf16>, vector<8x8xbf16>, vector<8x8xf32> -> vector<8x8xf32>
    %cst_22 = arith.constant dense<0xFF800000> : vector<8xf32>
    %62 = vector.multi_reduction <maximumf>, %61, %cst_22 [1] : vector<8x8xf32> to vector<8xf32>
    %63 = vector.shape_cast %62 : vector<8xf32> to vector<8x1xf32>
    %64 = vector.broadcast %63 : vector<8x1xf32> to vector<8x8xf32>
    %65 = arith.subf %61, %64 : vector<8x8xf32>
    %66 = math.exp %65 : vector<8x8xf32>
    %cst_23 = arith.constant dense<0.000000e+00> : vector<8xf32>
    %67 = vector.multi_reduction <add>, %66, %cst_23 [1] : vector<8x8xf32> to vector<8xf32>
    %68 = vector.shape_cast %67 : vector<8xf32> to vector<8x1xf32>
    %69 = arith.truncf %66 : vector<8x8xf32> to vector<8x8xbf16>
    %cst_24 = arith.constant dense<0.000000e+00> : vector<8x8xf32>
    %70 = tpu.matmul %69, %60, %cst_24 {dimension_numbers = #tpu.dot_dimension_numbers<[1], [0], [0], [1], [0, 0, 1, 1], [], []>} : vector<8x8xbf16>, vector<8x8xbf16>, vector<8x8xf32> -> vector<8x8xf32>
    %71 = tpu.reciprocal %68 {approx = true} : vector<8x1xf32> -> vector<8x1xf32>
    %72 = vector.broadcast %71 : vector<8x1xf32> to vector<8x8xf32>
    %73 = arith.mulf %70, %72 : vector<8x8xf32>
    %74 = vector.extract_strided_slice %31 {offsets = [0, 16], sizes = [8, 8], strides = [1, 1]} : vector<8x96xf32> to vector<8x8xf32>
    %cst_25 = arith.constant 0.353553385 : f32
    %75 = vector.broadcast %cst_25 : f32 to vector<8x8xf32>
    %76 = arith.mulf %74, %75 : vector<8x8xf32>
    %77 = arith.truncf %76 : vector<8x8xf32> to vector<8x8xbf16>
    %78 = vector.extract_strided_slice %31 {offsets = [0, 48], sizes = [8, 8], strides = [1, 1]} : vector<8x96xf32> to vector<8x8xf32>
    %79 = arith.truncf %78 : vector<8x8xf32> to vector<8x8xbf16>
    %80 = vector.extract_strided_slice %31 {offsets = [0, 80], sizes = [8, 8], strides = [1, 1]} : vector<8x96xf32> to vector<8x8xf32>
    %81 = arith.truncf %80 : vector<8x8xf32> to vector<8x8xbf16>
    %cst_26 = arith.constant dense<0.000000e+00> : vector<8x8xf32>
    %82 = tpu.matmul %77, %79, %cst_26 {dimension_numbers = #tpu.dot_dimension_numbers<[1], [1], [0], [0], [0, 0, 1, 0], [], []>} : vector<8x8xbf16>, vector<8x8xbf16>, vector<8x8xf32> -> vector<8x8xf32>
    %cst_27 = arith.constant dense<0xFF800000> : vector<8xf32>
    %83 = vector.multi_reduction <maximumf>, %82, %cst_27 [1] : vector<8x8xf32> to vector<8xf32>
    %84 = vector.shape_cast %83 : vector<8xf32> to vector<8x1xf32>
    %85 = vector.broadcast %84 : vector<8x1xf32> to vector<8x8xf32>
    %86 = arith.subf %82, %85 : vector<8x8xf32>
    %87 = math.exp %86 : vector<8x8xf32>
    %cst_28 = arith.constant dense<0.000000e+00> : vector<8xf32>
    %88 = vector.multi_reduction <add>, %87, %cst_28 [1] : vector<8x8xf32> to vector<8xf32>
    %89 = vector.shape_cast %88 : vector<8xf32> to vector<8x1xf32>
    %90 = arith.truncf %87 : vector<8x8xf32> to vector<8x8xbf16>
    %cst_29 = arith.constant dense<0.000000e+00> : vector<8x8xf32>
    %91 = tpu.matmul %90, %81, %cst_29 {dimension_numbers = #tpu.dot_dimension_numbers<[1], [0], [0], [1], [0, 0, 1, 1], [], []>} : vector<8x8xbf16>, vector<8x8xbf16>, vector<8x8xf32> -> vector<8x8xf32>
    %92 = tpu.reciprocal %89 {approx = true} : vector<8x1xf32> -> vector<8x1xf32>
    %93 = vector.broadcast %92 : vector<8x1xf32> to vector<8x8xf32>
    %94 = arith.mulf %91, %93 : vector<8x8xf32>
    %95 = vector.extract_strided_slice %31 {offsets = [0, 24], sizes = [8, 8], strides = [1, 1]} : vector<8x96xf32> to vector<8x8xf32>
    %cst_30 = arith.constant 0.353553385 : f32
    %96 = vector.broadcast %cst_30 : f32 to vector<8x8xf32>
    %97 = arith.mulf %95, %96 : vector<8x8xf32>
    %98 = arith.truncf %97 : vector<8x8xf32> to vector<8x8xbf16>
    %99 = vector.extract_strided_slice %31 {offsets = [0, 56], sizes = [8, 8], strides = [1, 1]} : vector<8x96xf32> to vector<8x8xf32>
    %100 = arith.truncf %99 : vector<8x8xf32> to vector<8x8xbf16>
    %101 = vector.extract_strided_slice %31 {offsets = [0, 88], sizes = [8, 8], strides = [1, 1]} : vector<8x96xf32> to vector<8x8xf32>
    %102 = arith.truncf %101 : vector<8x8xf32> to vector<8x8xbf16>
    %cst_31 = arith.constant dense<0.000000e+00> : vector<8x8xf32>
    %103 = tpu.matmul %98, %100, %cst_31 {dimension_numbers = #tpu.dot_dimension_numbers<[1], [1], [0], [0], [0, 0, 1, 0], [], []>} : vector<8x8xbf16>, vector<8x8xbf16>, vector<8x8xf32> -> vector<8x8xf32>
    %cst_32 = arith.constant dense<0xFF800000> : vector<8xf32>
    %104 = vector.multi_reduction <maximumf>, %103, %cst_32 [1] : vector<8x8xf32> to vector<8xf32>
    %105 = vector.shape_cast %104 : vector<8xf32> to vector<8x1xf32>
    %106 = vector.broadcast %105 : vector<8x1xf32> to vector<8x8xf32>
    %107 = arith.subf %103, %106 : vector<8x8xf32>
    %108 = math.exp %107 : vector<8x8xf32>
    %cst_33 = arith.constant dense<0.000000e+00> : vector<8xf32>
    %109 = vector.multi_reduction <add>, %108, %cst_33 [1] : vector<8x8xf32> to vector<8xf32>
    %110 = vector.shape_cast %109 : vector<8xf32> to vector<8x1xf32>
    %111 = arith.truncf %108 : vector<8x8xf32> to vector<8x8xbf16>
    %cst_34 = arith.constant dense<0.000000e+00> : vector<8x8xf32>
    %112 = tpu.matmul %111, %102, %cst_34 {dimension_numbers = #tpu.dot_dimension_numbers<[1], [0], [0], [1], [0, 0, 1, 1], [], []>} : vector<8x8xbf16>, vector<8x8xbf16>, vector<8x8xf32> -> vector<8x8xf32>
    %113 = tpu.reciprocal %110 {approx = true} : vector<8x1xf32> -> vector<8x1xf32>
    %114 = vector.broadcast %113 : vector<8x1xf32> to vector<8x8xf32>
    %115 = arith.mulf %112, %114 : vector<8x8xf32>
    %116 = tpu.concatenate %52, %73, %94, %115 in 1 : vector<8x8xf32>, vector<8x8xf32>, vector<8x8xf32>, vector<8x8xf32> -> vector<8x32xf32>
    %117 = arith.truncf %116 : vector<8x32xf32> to vector<8x32xbf16>
    %c0_35 = arith.constant 0 : index
    %c0_36 = arith.constant 0 : index
    %118 = vector.load %arg6[%c0_35, %c0_36] : memref<32x32xbf16, #tpu.memory_space<vmem>>, vector<32x32xbf16>
    %cst_37 = arith.constant dense<0.000000e+00> : vector<8x32xf32>
    %119 = tpu.matmul %117, %118, %cst_37 {dimension_numbers = #tpu.dot_dimension_numbers<[1], [0], [0], [1], [0, 0, 1, 1], [], []>} : vector<8x32xbf16>, vector<32x32xbf16>, vector<8x32xf32> -> vector<8x32xf32>
    %c0_38 = arith.constant 0 : index
    %c0_39 = arith.constant 0 : index
    %120 = vector.load %arg7[%c0_38, %c0_39] : memref<1x32xf32, #tpu.memory_space<vmem>>, vector<1x32xf32>
    %121 = vector.broadcast %120 : vector<1x32xf32> to vector<8x32xf32>
    %122 = arith.addf %119, %121 : vector<8x32xf32>
    %123 = arith.addf %122, %1 : vector<8x32xf32>
    %c0_40 = arith.constant 0 : index
    %c0_41 = arith.constant 0 : index
    %124 = vector.load %arg8[%c0_40, %c0_41] : memref<1x32xf32, #tpu.memory_space<vmem>>, vector<1x32xf32>
    %c0_42 = arith.constant 0 : index
    %c0_43 = arith.constant 0 : index
    %125 = vector.load %arg9[%c0_42, %c0_43] : memref<1x32xf32, #tpu.memory_space<vmem>>, vector<1x32xf32>
    %cst_44 = arith.constant dense<0.000000e+00> : vector<8xf32>
    %126 = vector.multi_reduction <add>, %123, %cst_44 [1] : vector<8x32xf32> to vector<8xf32>
    %127 = vector.shape_cast %126 : vector<8xf32> to vector<8x1xf32>
    %cst_45 = arith.constant 3.200000e+01 : f32
    %128 = vector.broadcast %cst_45 : f32 to vector<8x1xf32>
    %129 = arith.divf %127, %128 : vector<8x1xf32>
    %130 = vector.broadcast %129 : vector<8x1xf32> to vector<8x32xf32>
    %131 = arith.subf %123, %130 : vector<8x32xf32>
    %132 = arith.mulf %131, %131 : vector<8x32xf32>
    %cst_46 = arith.constant dense<0.000000e+00> : vector<8xf32>
    %133 = vector.multi_reduction <add>, %132, %cst_46 [1] : vector<8x32xf32> to vector<8xf32>
    %134 = vector.shape_cast %133 : vector<8xf32> to vector<8x1xf32>
    %cst_47 = arith.constant 3.200000e+01 : f32
    %135 = vector.broadcast %cst_47 : f32 to vector<8x1xf32>
    %136 = arith.divf %134, %135 : vector<8x1xf32>
    %137 = vector.broadcast %129 : vector<8x1xf32> to vector<8x32xf32>
    %138 = arith.subf %123, %137 : vector<8x32xf32>
    %cst_48 = arith.constant 9.99999974E-6 : f32
    %139 = vector.broadcast %cst_48 : f32 to vector<8x1xf32>
    %140 = arith.addf %136, %139 : vector<8x1xf32>
    %141 = math.rsqrt %140 : vector<8x1xf32>
    %142 = vector.broadcast %141 : vector<8x1xf32> to vector<8x32xf32>
    %143 = arith.mulf %138, %142 : vector<8x32xf32>
    %144 = vector.broadcast %124 : vector<1x32xf32> to vector<8x32xf32>
    %145 = arith.mulf %143, %144 : vector<8x32xf32>
    %146 = vector.broadcast %125 : vector<1x32xf32> to vector<8x32xf32>
    %147 = arith.addf %145, %146 : vector<8x32xf32>
    %148 = arith.truncf %147 : vector<8x32xf32> to vector<8x32xbf16>
    %c0_49 = arith.constant 0 : index
    %c0_50 = arith.constant 0 : index
    %149 = vector.load %arg10[%c0_49, %c0_50] : memref<32x64xbf16, #tpu.memory_space<vmem>>, vector<32x64xbf16>
    %cst_51 = arith.constant dense<0.000000e+00> : vector<8x64xf32>
    %150 = tpu.matmul %148, %149, %cst_51 {dimension_numbers = #tpu.dot_dimension_numbers<[1], [0], [0], [1], [0, 0, 1, 1], [], []>} : vector<8x32xbf16>, vector<32x64xbf16>, vector<8x64xf32> -> vector<8x64xf32>
    %c0_52 = arith.constant 0 : index
    %c0_53 = arith.constant 0 : index
    %151 = vector.load %arg11[%c0_52, %c0_53] : memref<1x64xf32, #tpu.memory_space<vmem>>, vector<1x64xf32>
    %152 = vector.broadcast %151 : vector<1x64xf32> to vector<8x64xf32>
    %153 = arith.addf %150, %152 : vector<8x64xf32>
    %cst_54 = arith.constant 5.000000e-01 : f32
    %154 = vector.broadcast %cst_54 : f32 to vector<8x64xf32>
    %155 = arith.mulf %154, %153 : vector<8x64xf32>
    %cst_55 = arith.constant 0.707106769 : f32
    %156 = vector.broadcast %cst_55 : f32 to vector<8x64xf32>
    %157 = arith.mulf %153, %156 : vector<8x64xf32>
    %158 = math.erf %157 : vector<8x64xf32>
    %cst_56 = arith.constant 1.000000e+00 : f32
    %159 = vector.broadcast %cst_56 : f32 to vector<8x64xf32>
    %160 = arith.addf %159, %158 : vector<8x64xf32>
    %161 = arith.mulf %155, %160 : vector<8x64xf32>
    %162 = arith.truncf %161 : vector<8x64xf32> to vector<8x64xbf16>
    %c0_57 = arith.constant 0 : index
    %c0_58 = arith.constant 0 : index
    %163 = vector.load %arg12[%c0_57, %c0_58] : memref<64x32xbf16, #tpu.memory_space<vmem>>, vector<64x32xbf16>
    %cst_59 = arith.constant dense<0.000000e+00> : vector<8x32xf32>
    %164 = tpu.matmul %162, %163, %cst_59 {dimension_numbers = #tpu.dot_dimension_numbers<[1], [0], [0], [1], [0, 0, 1, 1], [], []>} : vector<8x64xbf16>, vector<64x32xbf16>, vector<8x32xf32> -> vector<8x32xf32>
    %c0_60 = arith.constant 0 : index
    %c0_61 = arith.constant 0 : index
    %165 = vector.load %arg13[%c0_60, %c0_61] : memref<1x32xf32, #tpu.memory_space<vmem>>, vector<1x32xf32>
    %166 = vector.broadcast %165 : vector<1x32xf32> to vector<8x32xf32>
    %167 = arith.addf %164, %166 : vector<8x32xf32>
    %168 = arith.addf %123, %167 : vector<8x32xf32>
    %c0_62 = arith.constant 0 : index
    %c0_63 = arith.constant 0 : index
    %c0_64 = arith.constant 0 : index
    %169 = vector.load %arg14[%c0_62, %c0_63, %c0_64] : memref<1x8x32xf32, #tpu.memory_space<vmem>>, vector<1x8x32xf32>
    %170 = vector.shape_cast %169 : vector<1x8x32xf32> to vector<8x32xf32>
    %171 = vector.shape_cast %168 : vector<8x32xf32> to vector<1x8x32xf32>
    tpu.vector_store %arg14[%c0_62, %c0_63, %c0_64], %171 {strides = array<i32>} : memref<1x8x32xf32, #tpu.memory_space<vmem>>, vector<1x8x32xf32>,
    return
  }
  func.func @transform_0(%arg0: i32) -> (i32, i32, i32) {
    %c0_i32 = arith.constant 0 : i32
    %c0_i32_0 = arith.constant 0 : i32
    %c0_i32_1 = arith.constant 0 : i32
    return %arg0, %c0_i32, %c0_i32_0 : i32, i32, i32
  }
  func.func @transform_1(%arg0: i32) -> (i32, i32) {
    %c0_i32 = arith.constant 0 : i32
    %c0_i32_0 = arith.constant 0 : i32
    %c0_i32_1 = arith.constant 0 : i32
    return %c0_i32, %c0_i32_0 : i32, i32
  }
  func.func @transform_2(%arg0: i32) -> (i32, i32) {
    %c0_i32 = arith.constant 0 : i32
    %c0_i32_0 = arith.constant 0 : i32
    %c0_i32_1 = arith.constant 0 : i32
    return %c0_i32, %c0_i32_0 : i32, i32
  }
  func.func @transform_3(%arg0: i32) -> (i32, i32) {
    %c0_i32 = arith.constant 0 : i32
    %c0_i32_0 = arith.constant 0 : i32
    %c0_i32_1 = arith.constant 0 : i32
    return %c0_i32, %c0_i32_0 : i32, i32
  }
  func.func @transform_4(%arg0: i32) -> (i32, i32) {
    %c0_i32 = arith.constant 0 : i32
    %c0_i32_0 = arith.constant 0 : i32
    %c0_i32_1 = arith.constant 0 : i32
    return %c0_i32, %c0_i32_0 : i32, i32
  }
  func.func @transform_5(%arg0: i32) -> (i32, i32) {
    %c0_i32 = arith.constant 0 : i32
    %c0_i32_0 = arith.constant 0 : i32
    %c0_i32_1 = arith.constant 0 : i32
    return %c0_i32, %c0_i32_0 : i32, i32
  }
  func.func @transform_6(%arg0: i32) -> (i32, i32) {
    %c0_i32 = arith.constant 0 : i32
    %c0_i32_0 = arith.constant 0 : i32
    %c0_i32_1 = arith.constant 0 : i32
    return %c0_i32, %c0_i32_0 : i32, i32
  }
  func.func @transform_7(%arg0: i32) -> (i32, i32) {
    %c0_i32 = arith.constant 0 : i32
    %c0_i32_0 = arith.constant 0 : i32
    %c0_i32_1 = arith.constant 0 : i32
    return %c0_i32, %c0_i32_0 : i32, i32
  }
  func.func @transform_8(%arg0: i32) -> (i32, i32) {
    %c0_i32 = arith.constant 0 : i32
    %c0_i32_0 = arith.constant 0 : i32
    %c0_i32_1 = arith.constant 0 : i32
    return %c0_i32, %c0_i32_0 : i32, i32
  }
  func.func @transform_9(%arg0: i32) -> (i32, i32) {
    %c0_i32 = arith.constant 0 : i32
    %c0_i32_0 = arith.constant 0 : i32
    %c0_i32_1 = arith.constant 0 : i32
    return %c0_i32, %c0_i32_0 : i32, i32
  }
  func.func @transform_10(%arg0: i32) -> (i32, i32) {
    %c0_i32 = arith.constant 0 : i32
    %c0_i32_0 = arith.constant 0 : i32
    %c0_i32_1 = arith.constant 0 : i32
    return %c0_i32, %c0_i32_0 : i32, i32
  }
  func.func @transform_11(%arg0: i32) -> (i32, i32) {
    %c0_i32 = arith.constant 0 : i32
    %c0_i32_0 = arith.constant 0 : i32
    %c0_i32_1 = arith.constant 0 : i32
    return %c0_i32, %c0_i32_0 : i32, i32
  }
  func.func @transform_12(%arg0: i32) -> (i32, i32) {
    %c0_i32 = arith.constant 0 : i32
    %c0_i32_0 = arith.constant 0 : i32
    %c0_i32_1 = arith.constant 0 : i32
    return %c0_i32, %c0_i32_0 : i32, i32
  }
  func.func @transform_13(%arg0: i32) -> (i32, i32, i32) {
    %c0_i32 = arith.constant 0 : i32
    %c0_i32_0 = arith.constant 0 : i32
    %c0_i32_1 = arith.constant 0 : i32
    return %arg0, %c0_i32, %c0_i32_0 : i32, i32, i32
  }
}

</mosaic_0001>

<bundles_post_ra>
// kernel: tpu_custom_call.1
= control target key start
LH: loop header
LB: loop body
LE: loop exit
PB: predicated region body
PF: predicated region fallthrough
CT: control target
= control target key end

     0   :  { %s2345_s0 = inlined_call_operand.vmem [shape: f32[2,8,32], index: 0, kind: input, shape index: {}]   ;;  %s2346_s1 = inlined_call_operand.vmem [shape: f32[1,32], index: 1, kind: input, shape index: {}]   ;;  %s2347_s2 = inlined_call_operand.vmem [shape: f32[1,32], index: 2, kind: input, shape index: {}]   ;;  %s2348_s3 = inlined_call_operand.vmem [shape: bf16[32,96], index: 3, kind: input, shape index: {}]   ;;  %s2349_s4 = inlined_call_operand.hbm [shape: f32[1,96], index: 4, kind: input, shape index: {}]   ;;  %s2350_s5 = inlined_call_operand.vmem [shape: bf16[32,32], index: 5, kind: input, shape index: {}]   ;;  %s2351_s6 = inlined_call_operand.hbm [shape: f32[1,32], index: 6, kind: input, shape index: {}]   ;;  %s2352_s7 = inlined_call_operand.hbm [shape: f32[1,32], index: 7, kind: input, shape index: {}]   ;;  %s2353_s8 = inlined_call_operand.hbm [shape: f32[1,32], index: 8, kind: input, shape index: {}]   ;;  %s2354_s9 = inlined_call_operand.vmem [shape: bf16[32,64], index: 9, kind: input, shape index: {}]   ;;  %s2355_s10 = inlined_call_operand.vmem [shape: f32[1,64], index: 10, kind: input, shape index: {}]   ;;  %s2356_s11 = inlined_call_operand.vmem [shape: bf16[64,32], index: 11, kind: input, shape index: {}]   ;;  %s2357_s12 = inlined_call_operand.vmem [shape: f32[1,32], index: 12, kind: input, shape index: {}]   ;;  %s2358_s13 = inlined_call_operand.hbm [shape: f32[2,8,32], index: 13, kind: output, shape index: {}]  }
   0x1   :  { %2369 = sst [smem:[#allocation21_spill]] %s2358_s13 }
   0x2   :  { %18 = vsyncpa [#allocation3], 0 }
   0x3   :  { %19 = vsyncpa [#allocation6], 0 }
   0x4   :  { %20 = vsyncpa [#allocation9], 0 }
   0x5   :  { %21 = vsyncpa [#allocation4], 0 }
   0x6   :  { %23 = vsyncpa [#allocation4 + $0x1], 0  ;;  %s1987_s25 = smov 0   ;;  %s1989_s26 = smov 0  }
   0x7   :  { %s1991_s27 = smov 0   ;;  %s1993_s28 = smov 0  }
   0x8 LB: > { %2370 = sst [smem:[#allocation15_spill]] %s1882_s25  ;;  %s2008_s29 = sadd.s32 4294967295, %s1894_s28   ;;  %s1894_s28 = sphi %s1993_s28, %s2394_s28   ;;  %s1890_s27 = sphi %s1991_s27, %s2396_s27   ;;  %s1886_s26 = sphi %s1989_s26, %s2398_s26   ;;  %s1882_s25 = sphi %s1987_s25, %s2397_s25  }
   0x9   : > { %2371 = sst [smem:[#allocation16_spill]] %s1890_s27  ;;  %s1418_s30 = sadd.s32 4294967294, %s1894_s28  }
   0xa   : > { %2372 = sst [smem:[#allocation17_spill]] %s1894_s28  ;;  %s2012_s14 = sadd.s32 1, %s1894_s28  }
   0xb   : > { %2373 = sst [smem:[#allocation18_spill]] %s2012_s14  ;;  %s314_s15 = sadd.s32 1, %s1890_s27 }
   0xc   : > { %s311_s16 = ssub.s32 %s1894_s28, %s2012_s14  ;;  %p324_p0 = scmp.ne.s32.totalorder %s1890_s27, %s1886_s26 }
   0xd   : > { %p312_p1 = scmp.eq.s32.totalorder %s311_s16, 0  ;;  %p325_p2 = scmp.eq.s32.totalorder %s2008_s29, 1 }
   0xe   : > { %p330_p3 = scmp.ne.s32.totalorder %s1886_s26, %s1882_s25  ;;  %p331_p4 = scmp.eq.s32.totalorder %s1418_s30, 1 }
   0xf   : > { %s2023_s17 = scalar_select %p312_p1, %s1890_s27, %s314_s15  }
  0x10   : > { %p2025_p5 = por %p325_p2, %p324_p0  ;;  %p2029_p6 = por %p331_p4, %p330_p3 }
  0x11   : > { %2374 = sst [smem:[#allocation19_spill]] %s2023_s17  ;;  %p1419_p7 = scmp.ge.s32.totalorder %s1894_s28, 1 }
  0x12   : > { %s2375_s18 = scalar_select %p2025_p5, 1, 0 }
  0x13   : > { %s2376_s19 = scalar_select %p2029_p6, 1, 0 }
  0x14   : > { %p338_p8 = scmp.lt.s32.totalorder %s1894_s28, 3  ;;  %p2364_p9 = scmp.eq.s32.totalorder %s2008_s29, 0 }
  0x15   : > { %2377 = sst [smem:[#allocation20_spill]] %s2376_s19  ;;  %s1896_s21 = smov [#allocation5]  }
  0x16   : > { %p2036_p10 = pnand %p1419_p7, %p338_p8  ;;  %s374_s22 = sshll.u32 %s1896_s21, 4  ;;  %s375_s22 = int_to_ptr.vmem [resolvable:$true] %s374_s22 }
  0x17   : > { %s1897_s23 = smov [#allocation2]   ;;  %s1898_s15 = smov [#allocation7]  }
  0x18   : > { %s2378_s20 = scalar_select %p2036_p10, 1, 0 }
  0x19   : > { %p1598_p11 = pneg %p2036_p10  ;;  %s360_s24 = sshll.u32 %s1897_s23, 4  ;;  %s2048_s24 = int_to_ptr.vmem [resolvable:$true] %s360_s24 }
  0x1a   : > { %s385_s16 = sshll.u32 %s1898_s15, 4  ;;  %s1708_s21 = scalar_lea.hbm %s2351_s6, 16  ;;  %s2050_s16 = int_to_ptr.vmem [resolvable:$true] %s385_s16 }
  0x1b   : > { %p2044_p12 = pnand %p2364_p9, %p1598_p11  ;;  %p1709_p13 = scmp.ne.s32.totalorder %s2351_s6, %s1708_s21 }
  0x1c   : > { %p1715_p3 = scmp.lt.u32.totalorder %s1708_s21, %s2351_s6 }
  0x1d   : > { %p2060_p0 = pneg %p2044_p12 }
  0x1f   : > { %p1711_p1 = pnand %p2060_p0, %p1709_p13 }
  0x21   : > { %p1712_p2 = pneg %p1711_p1 }
  0x23   : > { %p1717_p4 = pnand %p1715_p3, %p1712_p2 }
  0x25   : > { %1720 = shalt.err (!%p1717_p4)
}
  0x26   : > { %s1721_s27 = scalar_lea.vmem %s375_s22, 16  ;;  %s1728_s14 = scalar_lea.vmem %s375_s22, 32 }
  0x27   : > { %p1722_p7 = scmp.ne.s32.totalorder %s375_s22, %s1721_s27  ;;  %p1729_p9 = scmp.lt.s32.totalorder %s375_s22, %s375_s22 }
  0x28   : > { %p1730_p6 = scmp.lt.s32.totalorder %s1728_s14, %s1721_s27 }
  0x29   : > { %p1724_p8 = pnand %p1722_p7, %p2060_p0 }
  0x2a   : > { %p1731_p5 = por %p1730_p6, %p1729_p9 }
  0x2b   : > { %p1725_p11 = pneg %p1724_p8 }
  0x2d   : > { %p1732_p10 = pnand %p1731_p5, %p1725_p11 }
  0x2f   : > { %1735 = shalt.err (!%p1732_p10)
}
  0x30   : > { %1604 = dma.hbm_to_vmem [thread:$0]  (!%p2044_p12), %s2351_s6, 16, %s375_s22, [#allocation6]  }
  0x31   : > { %s1736_s15 = scalar_lea.hbm %s2349_s4, 16 }
  0x32   : > { %p1737_p13 = scmp.ne.s32.totalorder %s2349_s4, %s1736_s15  ;;  %p1743_p5 = scmp.lt.u32.totalorder %s1736_s15, %s2349_s4 }
  0x34   : > { %p1739_p1 = pnand %p1737_p13, %p2060_p0 }
  0x36   : > { %p1740_p6 = pneg %p1739_p1 }
  0x38   : > { %p1745_p9 = pnand %p1743_p5, %p1740_p6 }
  0x3a   : > { %1748 = shalt.err (!%p1745_p9)
}
  0x3b   : > { %s1749_s22 = scalar_lea.vmem %s2048_s24, 16  ;;  %s1756_s13 = scalar_lea.vmem %s2048_s24, 32 }
  0x3c   : > { %p1750_p10 = scmp.ne.s32.totalorder %s2048_s24, %s1749_s22  ;;  %p1757_p4 = scmp.lt.s32.totalorder %s2048_s24, %s2048_s24 }
  0x3d   : > { %p1758_p7 = scmp.lt.s32.totalorder %s1756_s13, %s1749_s22 }
  0x3e   : > { %p1752_p2 = pnand %p1750_p10, %p2060_p0 }
  0x3f   : > { %p1759_p8 = por %p1758_p7, %p1757_p4 }
  0x40   : > { %p1753_p3 = pneg %p1752_p2 }
  0x42   : > { %p1760_p11 = pnand %p1759_p8, %p1753_p3 }
  0x44   : > { %1763 = shalt.err (!%p1760_p11)
}
  0x45   : > { %1601 = dma.hbm_to_vmem [thread:$0]  (!%p2044_p12), %s2349_s4, 16, %s2048_s24, [#allocation3]  }
  0x46   : > { %s1764_s21 = scalar_lea.hbm %s2352_s7, 16 }
  0x47   : > { %p1765_p13 = scmp.ne.s32.totalorder %s2352_s7, %s1764_s21  ;;  %p1771_p5 = scmp.lt.u32.totalorder %s1764_s21, %s2352_s7 }
  0x49   : > { %p1767_p1 = pnand %p1765_p13, %p2060_p0 }
  0x4b   : > { %p1768_p6 = pneg %p1767_p1 }
  0x4d   : > { %p1773_p9 = pnand %p1771_p5, %p1768_p6 }
  0x4f   : > { %1776 = shalt.err (!%p1773_p9)
}
  0x50   : > { %s1777_s24 = scalar_lea.vmem %s2050_s16, 16  ;;  %s1784_s13 = scalar_lea.vmem %s2050_s16, 32 }
  0x51   : > { %p1778_p10 = scmp.ne.s32.totalorder %s2050_s16, %s1777_s24  ;;  %p1785_p4 = scmp.lt.s32.totalorder %s2050_s16, %s2050_s16 }
  0x52   : > { %p1786_p7 = scmp.lt.s32.totalorder %s1784_s13, %s1777_s24 }
  0x53   : > { %p1780_p2 = pnand %p1778_p10, %p2060_p0 }
  0x54   : > { %p1787_p8 = por %p1786_p7, %p1785_p4 }
  0x55   : > { %p1781_p3 = pneg %p1780_p2 }
  0x57   : > { %p1788_p11 = pnand %p1787_p8, %p1781_p3 }
  0x59   : > { %1791 = shalt.err (!%p1788_p11)
}
  0x5a   : > { %1607 = dma.hbm_to_vmem [thread:$0]  (!%p2044_p12), %s2352_s7, 16, %s2050_s16, [#allocation6]  }
  0x5b   : > { %s1899_s19 = smov [#allocation8]   ;;  %s1792_s27 = scalar_lea.hbm %s2353_s8, 16 }
  0x5c   : > { %s396_s25 = sshll.u32 %s1899_s19, 4  ;;  %p1793_p13 = scmp.ne.s32.totalorder %s2353_s8, %s1792_s27  ;;  %s397_s25 = int_to_ptr.vmem [resolvable:$true] %s396_s25 }
  0x5d   : > { %p1799_p5 = scmp.lt.u32.totalorder %s1792_s27, %s2353_s8 }
  0x5e   : > { %p1795_p1 = pnand %p1793_p13, %p2060_p0 }
  0x60   : > { %p1796_p6 = pneg %p1795_p1 }
  0x62   : > { %p1801_p9 = pnand %p1799_p5, %p1796_p6 }
  0x64   : > { %1804 = shalt.err (!%p1801_p9)
}
  0x65   : > { %s1805_s16 = scalar_lea.vmem %s397_s25, 16  ;;  %s1812_s28 = scalar_lea.vmem %s397_s25, 32 }
  0x66   : > { %p1806_p10 = scmp.ne.s32.totalorder %s397_s25, %s1805_s16  ;;  %p1813_p4 = scmp.lt.s32.totalorder %s397_s25, %s397_s25 }
  0x67   : > { %p1814_p7 = scmp.lt.s32.totalorder %s1812_s28, %s1805_s16 }
  0x68   : > { %p1808_p2 = pnand %p1806_p10, %p2060_p0 }
  0x69   : > { %p1815_p8 = por %p1814_p7, %p1813_p4 }
  0x6a   : > { %p1809_p3 = pneg %p1808_p2 }
  0x6c   : > { %p1816_p11 = pnand %p1815_p8, %p1809_p3 }
  0x6e   : > { %1819 = shalt.err (!%p1816_p11)
}
  0x6f   : > { %1610 = dma.hbm_to_vmem [thread:$0]  (!%p2044_p12), %s2353_s8, 16, %s397_s25, [#allocation9]  }
  0x70   : > { %p2381_p13 = scmp.ne.s32.totalorder %s2378_s20, 0 }
  0x71   : > { %p2382_p1 = scmp.eq.s32.totalorder (!%p2381_p13), %s2008_s29, 0 }
  0x72   : > { %428 = sbr.rel (%p2381_p13) target bundleno = 2549 (0x9f5), region = 72 }
  0x79   : > { %1865 = dma.done.wait (%p2382_p1), [#allocation3], 16   ;;  %p2383_p0 = pmov %p2382_p1 }
  0x7b   : > { %1867 = vsyncadd (%p2383_p0), [#allocation3], 4294967280  ;;  %p2384_p6 = pmov %p2383_p0 }
  0x7c   : > { %p2385_p5 = pmov %p2383_p0 }
  0x7d   : > { %1869 = dma.done.wait (%p2384_p6), [#allocation6], 32  }
  0x7e   : > { %1871 = vsyncadd (%p2385_p5), [#allocation6], 4294967264  ;;  %p2386_p9 = pmov %p2383_p0 }
  0x7f   : > { %p2387_p12 = pmov %p2383_p0 }
  0x80   : > { %1873 = dma.done.wait (%p2386_p9), [#allocation9], 16  }
  0x81   : > { %1875 = vsyncadd (%p2387_p12), [#allocation9], 4294967280  ;;  %p483_p10 = scmp.lt.s32.totalorder %s2008_s29, 1  ;;  %vm491_vm0 = vcmask 261120   ;;  %v1676_v7 = vld [vmem:[%s2348_s3] sm:$0xff]   ;;  %v1900_v8 = vmov 0.0  }
  0x82   : > { %1496 = vmatprep.subr.bf16.mxu0 %v1900_v8  ;;  %vm1901_vm1 = vmmov 0   ;;  %v1677_v9 = vld [vmem:[%s2348_s3 + $0x8] sm:$0xff]   ;;  %1504 = vmatprep.subr.bf16.mxu1 %v1900_v8  ;;  %v1432_v14 = vld [vmem:[%s2346_s1] ss:$0 sm:$0xff]  ;;  %s1902_s17 = smov 96   ;;  %s1903_s19 = smov 120  }
  0x83   : > { %s484_s20 = scalar_select %p483_p10, %s2008_s29, 1  ;;  %1500 = vmatprep.mubr.msk.bf16.mxu0 %vm1901_vm1, %v1900_v8  ;;  %1497 = vmatpush3.bf16.msra.mxu0 %v1676_v7  ;;  %v1433_v16 = vld [vmem:[%s2347_s2] ss:$0 sm:$0xff]  ;;  %vm593_vm2 = vcmask 64512   ;;  %vm655_vm3 = vcmask 1043456   ;;  %vm1045_vm4 = vcmask 130048  }
  0x84   : > { %1498 = vmatprep.subr.bf16.mxu0 %v1900_v8  ;;  %1506 = vmatprep.mubr.msk.bf16.mxu1 %vm1901_vm1, %v1900_v8  ;;  %v1434_v20 = vld [vmem:[#allocation2] ss:$0 sm:$0xff]  ;;  %s1906_s23 = smov 112   ;;  %s1907_s25 = smov 72   ;;  %vm1047_vm5 = vcmask 195584   ;;  %vm1258_vm6 = vcmask 523264  }
  0x85   : > { %s1431_s30 = sshll.u32 %s484_s20, 3  ;;  %s1904_s20 = smov 88  }
  0x86   : > { %s486_s21 = scalar_lea.vmem %s2345_s0, %s1431_s30  ;;  %s1905_s30 = smov 80  }
  0x87   : > { %v2161_v0 = vld [vmem:[%s486_s21] sm:$0xff]  ;;  %1499 = vmatpush3.bf16.msra.mxu0 %v1677_v9  ;;  %s1908_s21 = smov 104   ;;  %s1909_s15 = smov 64  }
  0x88   : > { %v492_v1 = vsel %vm491_vm0, %v2161_v0, 0.0  ;;  %1510 = vmatprep.subr.bf16.mxu0 %v1900_v8  ;;  %s1910_s27 = smov 56   ;;  %s1911_s14 = smov 48  }
  0x89   : > { %493 = vadd.xlane.f32.xlu0 %v492_v1  ;;  %s1912_s22 = smov 40   ;;  %s1913_s24 = smov 8  }
  0x8a   : > { %p2389_p3 = scmp.ne.s32.totalorder %s2375_s18, 0  ;;  %s1916_s28 = smov [#allocation10]  }
 0x116   : > { %v494_v2 = vpop.xlane.xlu0 %493 }
 0x117   : > { %v496_v3 = vmul.f32 0.03125, %v494_v2 }
 0x119   : > { %v497_v4 = vsub.f32 %v2161_v0, %v496_v3 }
 0x11b   : > { %v498_v5 = vmul.f32 %v497_v4, %v497_v4 }
 0x11d   : > { %v499_v6 = vsel %vm491_vm0, %v498_v5, 0.0 }
 0x11e   : > { %500 = vadd.xlane.f32.xlu0 %v499_v6 }
 0x1ab   : > { %v501_v10 = vpop.xlane.xlu0 %500 }
 0x1ac   : > { %v502_v11 = vmul.f32 0.03125, %v501_v10 }
 0x1ae   : > { %v503_v12 = vadd.f32 1e-05, %v502_v11 }
 0x1b0   : > { %1686 = vrsqrt.f32 %v503_v12 }
 0x1ba   : > { %v1687_v13 = vpop.eup %1686 }
 0x1bb   : > { %v505_v15 = vmul.f32 %v1687_v13, %v497_v4 }
 0x1bd   : > { %v512_v17 = vmul.f32 %v1432_v14, %v505_v15 }
 0x1bf   : > { %v519_v18 = vadd.f32 %v1433_v16, %v512_v17 }
 0x1c1   : > { %v520_v19 = vpack.c.bf16 %v519_v18, %v519_v18 }
 0x1c3   : > { %1501 = vmatmul.mubr.msk.bf16.vlgmr.msra.gmra.mrb[0].mxu0 %vm491_vm0, %v520_v19 }
 0x1c4   : > { %1512 = vmatprep.mubr.msk.bf16.mxu0 %vm1901_vm1, %v1900_v8 }
 0x296   : > { %v581_v21 = vpop.f32.mrb[0].mxu0 }
 0x297   : > { %v582_v22 = vadd.f32 %v1434_v20, %v581_v21  ;;  %v1502_v23 = vpop.f32.mrb[1].mxu0 }
 0x298   : > { %v584_v24 = vpop.f32.mrb[2].mxu0 }
 0x299   : > { %v587_v25 = vmul.f32 0.35355338, %v582_v22  ;;  %v2190_v26 = vpack.c.bf16 %v582_v22, %v582_v22  ;;  %v1503_v27 = vpop.f32.mrb[3].mxu0 }
 0x29b   : > { %v588_v28 = vpack.c.bf16 %v587_v25, %v587_v25  ;;  %591 = vrot.lane.b32.xlu1 %v2190_v26, %s1902_s17  ;;  %s1824_s17 = sshll.u32 %s1916_s28, 4  ;;  %s1825_s17 = int_to_ptr.vmem [resolvable:$false] %s1824_s17 }
 0x29d   : > { %702 = vrot.lane.b32.xlu0 %v588_v28, %s1903_s19  ;;  %s1914_s19 = smov 16  }
 0x29f   : > { %704 = vrot.lane.b32.xlu1 %v2190_v26, %s1904_s20  ;;  %s1915_s20 = smov 24  }
 0x2a3   : > { %814 = vrot.lane.b32.xlu1 %v2190_v26, %s1905_s30 }
 0x2a7   : > { %812 = vrot.lane.b32.xlu1 %v588_v28, %s1906_s23 }
 0x2ab   : > { %924 = vrot.lane.b32.xlu1 %v2190_v26, %s1907_s25 }
 0x2af   : > { %922 = vrot.lane.b32.xlu1 %v588_v28, %s1908_s21  ;;  %s1463_s21 = sshll.u32 %s2008_s29, 7 }
 0x30d   : > { %v592_v29 = vpop.permute.xlu1 %591 }
 0x30e   : > { %v598_v30 = vsel %vm593_vm2, %v592_v29, 0 }
 0x30f   : > { %1505 = vmatpush3.bf16.xpose.msra.mxu1 %v598_v30  ;;  %v703_v34 = vpop.permute.xlu0 %702 }
 0x310   : > { %1516 = vmatprep.subr.bf16.mxu1 %v1900_v8 }
 0x311   : > { %v705_v31 = vpop.permute.xlu1 %704 }
 0x312   : > { %v710_v32 = vsel %vm593_vm2, %v705_v31, 0 }
 0x315   : > { %v815_v33 = vpop.permute.xlu1 %814 }
 0x316   : > { %1507 = vmatmul.mubr.msk.bf16.vlgmr.msra.gmra.mrb[0].mxu1 %vm593_vm2, %v588_v28  ;;  %v820_v36 = vsel %vm593_vm2, %v815_v33, 0 }
 0x317   : > { %1517 = vmatpush3.bf16.xpose.msra.mxu1 %v710_v32  ;;  %1518 = vmatprep.mubr.msk.bf16.mxu1 %vm1901_vm1, %v1900_v8 }
 0x318   : > { %1528 = vmatprep.subr.bf16.mxu1 %v1900_v8 }
 0x319   : > { %v813_v35 = vpop.permute.xlu1 %812 }
 0x31d   : > { %v925_v37 = vpop.permute.xlu1 %924 }
 0x31e   : > { %1519 = vmatmul.mubr.msk.bf16.vlgmr.msra.gmra.mrb[4].mxu1 %vm593_vm2, %v703_v34  ;;  %v930_v38 = vsel %vm593_vm2, %v925_v37, 0 }
 0x31f   : > { %1529 = vmatpush3.bf16.xpose.msra.mxu1 %v820_v36  ;;  %1530 = vmatprep.mubr.msk.bf16.mxu1 %vm1901_vm1, %v1900_v8 }
 0x320   : > { %1540 = vmatprep.subr.bf16.mxu1 %v1900_v8 }
 0x321   : > { %v923_v39 = vpop.permute.xlu1 %922 }
 0x326   : > { %1531 = vmatmul.mubr.msk.bf16.vlgmr.msra.gmra.mrb[8].mxu1 %vm593_vm2, %v813_v35 }
 0x327   : > { %1541 = vmatpush3.bf16.xpose.msra.mxu1 %v930_v38  ;;  %1542 = vmatprep.mubr.msk.bf16.mxu1 %vm1901_vm1, %v1900_v8 }
 0x328   : > { %1552 = vmatprep.subr.bf16.mxu1 %v1900_v8 }
 0x32e   : > { %1543 = vmatmul.mubr.msk.bf16.vlgmr.msra.gmra.mrb[12].mxu1 %vm593_vm2, %v923_v39 }
 0x32f   : > { %1556 = vmatprep.mubr.msk.bf16.mxu1 %vm1901_vm1, %v1900_v8 }
 0x3e9   : > { %v634_v40 = vpop.f32.mrb[0].mxu1 }
 0x3ea   : > { %v1508_v41 = vpop.f32.mrb[1].mxu1  ;;  %v640_v42 = vsel %vm593_vm2, %v634_v40, -inf }
 0x3eb   : > { %641 = vmax.xlane.f32.xlu1 %v640_v42  ;;  %v637_v43 = vpop.f32.mrb[2].mxu1  ;;  %v1678_v42 = vld [vmem:[%s2350_s5] sm:$0xff]  }
 0x3ec   : > { %v1509_v44 = vpop.f32.mrb[3].mxu1  ;;  %1553 = vmatpush3.bf16.msra.mxu1 %v1678_v42  ;;  %v1679_v43 = vld [vmem:[%s2350_s5 + $0x8] sm:$0xff]  }
 0x3ed   : > { %1554 = vmatprep.subr.bf16.mxu1 %v1900_v8 }
 0x3f0   : > { %1555 = vmatpush3.bf16.msra.mxu1 %v1679_v43 }
 0x3f1   : > { %v746_v45 = vpop.f32.mrb[4].mxu1  ;;  %1568 = vmatprep.subr.bf16.mxu1 %v1900_v8 }
 0x3f2   : > { %v1520_v46 = vpop.f32.mrb[5].mxu1  ;;  %v752_v47 = vsel %vm593_vm2, %v746_v45, -inf }
 0x3f3   : > { %753 = vmax.xlane.f32.xlu0 %v752_v47  ;;  %v749_v48 = vpop.f32.mrb[6].mxu1 }
 0x3f4   : > { %v1521_v49 = vpop.f32.mrb[7].mxu1 }
 0x3f9   : > { %v856_v50 = vpop.f32.mrb[8].mxu1 }
 0x3fa   : > { %v1532_v51 = vpop.f32.mrb[9].mxu1  ;;  %v862_v59 = vsel %vm593_vm2, %v856_v50, -inf }
 0x3fb   : > { %v859_v52 = vpop.f32.mrb[10].mxu1 }
 0x3fc   : > { %650 = vrot.lane.b32.xlu1 %v2190_v26, %s1909_s15  ;;  %v1533_v53 = vpop.f32.mrb[11].mxu1 }
 0x401   : > { %v966_v54 = vpop.f32.mrb[12].mxu1 }
 0x402   : > { %v1544_v55 = vpop.f32.mrb[13].mxu1  ;;  %v972_v56 = vsel %vm593_vm2, %v966_v54, -inf }
 0x403   : > { %973 = vmax.xlane.f32.xlu0 %v972_v56  ;;  %v969_v57 = vpop.f32.mrb[14].mxu1 }
 0x404   : > { %v1545_v58 = vpop.f32.mrb[15].mxu1 }
 0x419   : > { %762 = vrot.lane.b32.xlu0 %v2190_v26, %s1910_s27 }
 0x420   : > { %863 = vmax.xlane.f32.xlu1 %v862_v59 }
 0x431   : > { %872 = vrot.lane.b32.xlu1 %v2190_v26, %s1911_s14 }
 0x435   : > { %982 = vrot.lane.b32.xlu1 %v2190_v26, %s1912_s22 }
 0x478   : > { %v642_v60 = vpop.xlane.xlu1 %641 }
 0x479   : > { %v643_v61 = vsub.f32 %v634_v40, %v642_v60 }
 0x47b   : > { %v644_v62 = vmul.f32 1.442695, %v643_v61 }
 0x47c   : > { %v651_v63 = vpop.permute.xlu1 %650 }
 0x47d   : > { %1688 = vpow2.f32 %v644_v62  ;;  %v657_v1 = vsel %vm655_vm3, %v651_v63, 0 }
 0x47e   : > { %1511 = vmatpush3.bf16.msra.mxu0 %v657_v1 }
 0x47f   : > { %1522 = vmatprep.subr.bf16.mxu0 %v1900_v8 }
 0x480   : > { %v754_v2 = vpop.xlane.xlu0 %753 }
 0x481   : > { %v755_v3 = vsub.f32 %v746_v45, %v754_v2 }
 0x483   : > { %v756_v4 = vmul.f32 1.442695, %v755_v3 }
 0x485   : > { %1690 = vpow2.f32 %v756_v4  ;;  %v1446_v4 = vld [vmem:[#allocation5] ss:$0 sm:$0xff] }
 0x487   : > { %v1689_v5 = vpop.eup %1688 }
 0x488   : > { %v649_v6 = vpack.c.bf16 %v1689_v5, %v1689_v5  ;;  %v646_v18 = vsel %vm593_vm2, %v1689_v5, 0.0 }
 0x48a   : > { %1513 = vmatmul.mubr.msk.bf16.vlgmr.msra.gmra.mrb[4].mxu0 %vm593_vm2, %v649_v6 }
 0x48b   : > { %1524 = vmatprep.mubr.msk.bf16.mxu0 %vm1901_vm1, %v1900_v8 }
 0x48f   : > { %v1691_v7 = vpop.eup %1690 }
 0x490   : > { %v974_v9 = vpop.xlane.xlu0 %973  ;;  %v758_v10 = vsel %vm593_vm2, %v1691_v7, 0.0  ;;  %v761_v15 = vpack.c.bf16 %v1691_v7, %v1691_v7 }
 0x491   : > { %v975_v11 = vsub.f32 %v966_v54, %v974_v9  ;;  %759 = vadd.xlane.f32.xlu0 %v758_v10 }
 0x493   : > { %v976_v12 = vmul.f32 1.442695, %v975_v11 }
 0x494   : > { %v763_v13 = vpop.permute.xlu0 %762 }
 0x495   : > { %1692 = vpow2.f32 %v976_v12  ;;  %v768_v14 = vsel %vm655_vm3, %v763_v13, 0 }
 0x496   : > { %1523 = vmatpush3.bf16.msra.mxu0 %v768_v14 }
 0x497   : > { %1534 = vmatprep.subr.bf16.mxu0 %v1900_v8 }
 0x499   : > { %1525 = vmatmul.mubr.msk.bf16.vlgmr.msra.gmra.mrb[8].mxu0 %vm593_vm2, %v761_v15 }
 0x49a   : > { %1536 = vmatprep.mubr.msk.bf16.mxu0 %vm1901_vm1, %v1900_v8 }
 0x49f   : > { %v1693_v16 = vpop.eup %1692 }
 0x4a0   : > { %v978_v17 = vsel %vm593_vm2, %v1693_v16, 0.0  ;;  %v981_v29 = vpack.c.bf16 %v1693_v16, %v1693_v16 }
 0x4a1   : > { %979 = vadd.xlane.f32.xlu0 %v978_v17 }
 0x4a5   : > { %647 = vadd.xlane.f32.xlu0 %v646_v18  ;;  %v1680_v18 = vld [vmem:[%s2354_s9] sm:$0xff]  }
 0x4ad   : > { %v864_v19 = vpop.xlane.xlu1 %863 }
 0x4ae   : > { %v865_v20 = vsub.f32 %v856_v50, %v864_v19 }
 0x4b0   : > { %v866_v21 = vmul.f32 1.442695, %v865_v20 }
 0x4b1   : > { %v873_v22 = vpop.permute.xlu1 %872 }
 0x4b2   : > { %1694 = vpow2.f32 %v866_v21  ;;  %v878_v23 = vsel %vm655_vm3, %v873_v22, 0 }
 0x4b3   : > { %1535 = vmatpush3.bf16.msra.mxu0 %v878_v23  ;;  %v1450_v23 = vld [vmem:[#allocation7] ss:$0 sm:$0xff] }
 0x4b4   : > { %1546 = vmatprep.subr.bf16.mxu0 %v1900_v8 }
 0x4b5   : > { %v983_v25 = vpop.permute.xlu1 %982 }
 0x4b6   : > { %v988_v28 = vsel %vm655_vm3, %v983_v25, 0  ;;  %v1451_v25 = vld [vmem:[#allocation8] ss:$0 sm:$0xff] }
 0x4bc   : > { %v1695_v24 = vpop.eup %1694 }
 0x4bd   : > { %v868_v26 = vsel %vm593_vm2, %v1695_v24, 0.0  ;;  %v871_v27 = vpack.c.bf16 %v1695_v24, %v1695_v24 }
 0x4be   : > { %869 = vadd.xlane.f32.xlu1 %v868_v26 }
 0x4bf   : > { %1537 = vmatmul.mubr.msk.bf16.vlgmr.msra.gmra.mrb[12].mxu0 %vm593_vm2, %v871_v27 }
 0x4c0   : > { %1547 = vmatpush3.bf16.msra.mxu0 %v988_v28  ;;  %1548 = vmatprep.mubr.msk.bf16.mxu0 %vm1901_vm1, %v1900_v8 }
 0x4c1   : > { %1560 = vmatprep.subr.bf16.mxu0 %v1900_v8 }
 0x4c7   : > { %1549 = vmatmul.mubr.msk.bf16.vlgmr.msra.gmra.mrb[16].mxu0 %vm593_vm2, %v981_v29  ;;  %v1682_v29 = vld [vmem:[%s2356_s11] sm:$0xff]  }
 0x4c8   : > { %1564 = vmatprep.mubr.msk.bf16.mxu0 %vm1901_vm1, %v1900_v8  ;;  %1561 = vmatpush3.bf16.msra.mxu0 %v1680_v18 }
 0x4c9   : > { %1562 = vmatprep.subr.bf16.mxu0 %v1900_v8 }
 0x51e   : > { %v760_v32 = vpop.xlane.xlu0 %759 }
 0x51f   : > { %1696 = vrcp.f32 %v760_v32  ;;  %v1685_v32 = vld [vmem:[%s2356_s11 + $0x18] sm:$0xff]  }
 0x529   : > { %v1697_v35 = vpop.eup %1696 }
 0x52e   : > { %v980_v44 = vpop.xlane.xlu0 %979 }
 0x532   : > { %v648_v57 = vpop.xlane.xlu0 %647 }
 0x54b   : > { %v870_v41 = vpop.xlane.xlu1 %869 }
 0x54c   : > { %1698 = vrcp.f32 %v870_v41 }
 0x54d   : > { %1700 = vrcp.f32 %v980_v44  ;;  %v1456_v44 = vld [vmem:[%s2357_s12] ss:$0 sm:$0xff] }
 0x54e   : > { %1702 = vrcp.f32 %v648_v57 }
 0x556   : > { %v1699_v45 = vpop.eup %1698 }
 0x557   : > { %v1701_v51 = vpop.eup %1700 }
 0x558   : > { %v1703_v58 = vpop.eup %1702 }
 0x55d   : > { %v693_v30 = vpop.f32.mrb[4].mxu0 }
 0x55e   : > { %v1514_v31 = vpop.f32.mrb[5].mxu0  ;;  %v700_v60 = vmul.f32 %v1703_v58, %v693_v30  ;;  %v1683_v30 = vld [vmem:[%s2356_s11 + $0x8] sm:$0xff]  }
 0x55f   : > { %v696_v33 = vpop.f32.mrb[6].mxu0  ;;  %v1684_v31 = vld [vmem:[%s2356_s11 + $0x10] sm:$0xff]  }
 0x560   : > { %v1515_v34 = vpop.f32.mrb[7].mxu0  ;;  %v1452_v33 = vld [vmem:[%s2355_s10] ss:$0 sm:$0xff] }
 0x56c   : > { %v804_v36 = vpop.f32.mrb[8].mxu0 }
 0x56d   : > { %v811_v37 = vmul.f32 %v1697_v35, %v804_v36  ;;  %v1526_v38 = vpop.f32.mrb[9].mxu0 }
 0x56e   : > { %v807_v39 = vpop.f32.mrb[10].mxu0 }
 0x56f   : > { %1033 = vrot.lane.b32.xlu1 %v811_v37, %s1913_s24  ;;  %v1527_v40 = vpop.f32.mrb[11].mxu0  ;;  %s2388_s24 = sld [smem:[#allocation21_spill]] }
 0x575   : > { %s2302_s13 = scalar_lea.hbm %s2388_s24, %s1463_s21 }
 0x592   : > { %v914_v46 = vpop.f32.mrb[12].mxu0 }
 0x593   : > { %v921_v47 = vmul.f32 %v1699_v45, %v914_v46  ;;  %v1538_v48 = vpop.f32.mrb[13].mxu0 }
 0x594   : > { %v917_v49 = vpop.f32.mrb[14].mxu0 }
 0x595   : > { %1037 = vrot.lane.b32.xlu0 %v921_v47, %s1914_s19  ;;  %v1539_v50 = vpop.f32.mrb[15].mxu0  ;;  %s1826_s19 = scalar_lea.vmem %s1825_s17, 256 }
 0x59a   : > { %v1024_v52 = vpop.f32.mrb[16].mxu0 }
 0x59b   : > { %v1031_v53 = vmul.f32 %v1701_v51, %v1024_v52  ;;  %v1550_v54 = vpop.f32.mrb[17].mxu0 }
 0x59c   : > { %v1027_v55 = vpop.f32.mrb[18].mxu0 }
 0x59d   : > { %1041 = vrot.lane.b32.xlu1 %v1031_v53, %s1915_s20  ;;  %v1551_v56 = vpop.f32.mrb[19].mxu0  ;;  %s480_s20 = sand.u32 1, %s1886_s26  }
 0x59e   : > { %s1430_s30 = sshll.u32 %s480_s20, 3  ;;  %s1305_s29 = scalar_lea.sflag [#allocation4], %s480_s20 }
 0x59f   : > { %s482_s15 = scalar_lea.vmem [#allocation10], %s1430_s30 }
 0x5a0   : > { %s1318_s27 = sshll.u32 %s482_s15, 4  ;;  %s2304_s27 = int_to_ptr.vmem [resolvable:$true] %s1318_s27 }
 0x5a1   : > { %s1820_s16 = scalar_lea.vmem %s2304_s27, 128  ;;  %p1827_p8 = scmp.lt.s32.totalorder %s2304_s27, %s1825_s17 }
 0x5a2   : > { %p1821_p2 = scmp.ne.s32.totalorder %s2304_s27, %s1820_s16  ;;  %p1828_p11 = scmp.lt.s32.totalorder %s1826_s19, %s1820_s16 }
 0x5a4   : > { %p1822_p4 = pnand %p1821_p2, %p2389_p3  ;;  %p1829_p13 = por %p1828_p11, %p1827_p8 }
 0x5a6   : > { %p1823_p7 = pneg %p1822_p4 }
 0x5a8   : > { %p1830_p1 = pnand %p1829_p13, %p1823_p7 }
 0x5e1   : > { %v1034_v59 = vpop.permute.xlu1 %1033 }
 0x5e2   : > { %v1044_v62 = vsel %vm593_vm2, %v700_v60, %v1034_v59 }
 0x607   : > { %v1038_v61 = vpop.permute.xlu0 %1037 }
 0x608   : > { %v1046_v63 = vsel %vm1045_vm4, %v1044_v62, %v1038_v61 }
 0x60f   : > { %v1042_v1 = vpop.permute.xlu1 %1041 }
 0x610   : > { %v1048_v2 = vsel %vm1047_vm5, %v1046_v63, %v1042_v1 }
 0x611   : > { %v1049_v3 = vpack.c.bf16 %v1048_v2, %v1048_v2 }
 0x613   : > { %1557 = vmatmul.mubr.msk.bf16.vlgmr.msra.gmra.mrb[16].mxu1 %vm491_vm0, %v1049_v3 }
 0x614   : > { %1576 = vmatprep.mubr.msk.bf16.mxu1 %vm1901_vm1, %v1900_v8  ;;  %1569 = vmatpush3.bf16.msra.mxu1 %v1682_v29 }
 0x615   : > { %1570 = vmatprep.subr.bf16.mxu1 %v1900_v8 }
 0x618   : > { %1571 = vmatpush3.bf16.msra.mxu1 %v1683_v30 }
 0x619   : > { %1572 = vmatprep.subr.bf16.mxu1 %v1900_v8 }
 0x61c   : > { %1573 = vmatpush3.bf16.msra.mxu1 %v1684_v31 }
 0x61d   : > { %1574 = vmatprep.subr.bf16.mxu1 %v1900_v8 }
 0x620   : > { %1575 = vmatpush3.bf16.msra.mxu1 %v1685_v32 }
 0x6e6   : > { %v1110_v5 = vpop.f32.mrb[16].mxu1 }
 0x6e7   : > { %v1111_v6 = vadd.f32 %v1446_v4, %v1110_v5  ;;  %v1558_v7 = vpop.f32.mrb[17].mxu1 }
 0x6e8   : > { %v1113_v9 = vpop.f32.mrb[18].mxu1 }
 0x6e9   : > { %v2261_v10 = vadd.f32 %v1111_v6, %v2161_v0  ;;  %v1559_v11 = vpop.f32.mrb[19].mxu1  ;;  %v1681_v0 = vld [vmem:[%s2354_s9 + $0x8] sm:$0xff]  }
 0x6ea   : > { %1563 = vmatpush3.bf16.msra.mxu0 %v1681_v0 }
 0x6eb   : > { %v1119_v12 = vsel %vm491_vm0, %v2261_v10, 0.0 }
 0x6ec   : > { %1120 = vadd.xlane.f32.xlu1 %v1119_v12 }
 0x779   : > { %v1121_v13 = vpop.xlane.xlu1 %1120 }
 0x77a   : > { %v1122_v14 = vmul.f32 0.03125, %v1121_v13 }
 0x77c   : > { %v1123_v15 = vsub.f32 %v2261_v10, %v1122_v14 }
 0x77e   : > { %v1124_v16 = vmul.f32 %v1123_v15, %v1123_v15 }
 0x780   : > { %v1125_v17 = vsel %vm491_vm0, %v1124_v16, 0.0 }
 0x781   : > { %1126 = vadd.xlane.f32.xlu0 %v1125_v17 }
 0x80e   : > { %v1127_v19 = vpop.xlane.xlu0 %1126 }
 0x80f   : > { %v1128_v20 = vmul.f32 0.03125, %v1127_v19 }
 0x811   : > { %v1129_v21 = vadd.f32 1e-05, %v1128_v20 }
 0x813   : > { %1704 = vrsqrt.f32 %v1129_v21 }
 0x81d   : > { %v1705_v22 = vpop.eup %1704 }
 0x81e   : > { %v1131_v24 = vmul.f32 %v1705_v22, %v1123_v15 }
 0x820   : > { %v1138_v26 = vmul.f32 %v1450_v23, %v1131_v24 }
 0x822   : > { %v1145_v27 = vadd.f32 %v1451_v25, %v1138_v26 }
 0x824   : > { %v1146_v28 = vpack.c.bf16 %v1145_v27, %v1145_v27 }
 0x826   : > { %1565 = vmatmul.mubr.msk.bf16.vlgmr.msra.gmra.mrb[20].mxu0 %vm491_vm0, %v1146_v28 }
 0x8f9   : > { %v1207_v34 = vpop.f32.mrb[20].mxu0 }
 0x8fa   : > { %v1208_v35 = vadd.f32 %v1452_v33, %v1207_v34  ;;  %v1566_v36 = vpop.f32.mrb[21].mxu0 }
 0x8fb   : > { %v1210_v37 = vpop.f32.mrb[22].mxu0 }
 0x8fc   : > { %v1214_v38 = vmul.f32 0.70710677, %v1208_v35  ;;  %v1567_v39 = vpop.f32.mrb[23].mxu0  ;;  %v1213_v8 = vmul.f32 0.5, %v1208_v35 }
 0x8fe   : > { %1706 = verf.f32 %v1214_v38 }
 0x908   : > { %v1707_v40 = vpop.eup %1706 }
 0x909   : > { %v1216_v41 = vadd.f32 1.0, %v1707_v40 }
 0x90b   : > { %v1217_v42 = vmul.f32 %v1216_v41, %v1213_v8 }
 0x90d   : > { %v1218_v43 = vpack.c.bf16 %v1217_v42, %v1217_v42 }
 0x90f   : > { %1577 = vmatmul.mubr.msk.bf16.vlgmr.msra.gmra.mrb[20].mxu1 %vm1258_vm6, %v1218_v43 }
 0x9e2   : > { %v1296_v45 = vpop.f32.mrb[20].mxu1 }
 0x9e3   : > { %v1297_v46 = vadd.f32 %v1456_v44, %v1296_v45  ;;  %v1578_v47 = vpop.f32.mrb[21].mxu1 }
 0x9e4   : > { %v1299_v48 = vpop.f32.mrb[22].mxu1 }
 0x9e5   : > { %v1302_v49 = vadd.f32 %v1297_v46, %v2261_v10  ;;  %v1579_v50 = vpop.f32.mrb[23].mxu1 }
 0x9e7   : > { %1303 = vst.msk [vmem:[%s482_s15] sm:$0xff] %vm491_vm0, %v1302_v49 }
 0x9e8   : > { %1833 = shalt.err (!%p1830_p1)
}
 0x9e9   : > { %s1834_s20 = scalar_lea.hbm %s2302_s13, 128  ;;  %s1838_s25 = scalar_lea.hbm %s2388_s24, 256 }
 0x9ea   : > { %p1835_p0 = scmp.ne.s32.totalorder %s2302_s13, %s1834_s20  ;;  %p1839_p9 = scmp.lt.u32.totalorder %s2302_s13, %s2388_s24 }
 0x9eb   : > { %p1840_p12 = scmp.lt.u32.totalorder %s1838_s25, %s1834_s20  ;;  %p1842_p2 = scmp.lt.u32.totalorder %s1834_s20, %s2302_s13 }
 0x9ec   : > { %p1836_p6 = pnand %p1835_p0, %p2389_p3 }
 0x9ed   : > { %p1841_p10 = por %p1840_p12, %p1839_p9 }
 0x9ee   : > { %p1837_p5 = pneg %p1836_p6 }
 0x9ef   : > { %p1843_p4 = por %p1842_p2, %p1841_p10 }
 0x9f1   : > { %p1844_p7 = pnand %p1843_p4, %p1837_p5 }
 0x9f3   : > { %1847 = shalt.err (!%p1844_p7)
}
 0x9f4   : > { %1596 = dma.vmem_to_hbm [thread:$0]  (%p2389_p3), %s2304_s27, 128, %s2302_s13, %s1305_s29  }
 0x9f5 PF: > { %s2390_s14 = sld [smem:[#allocation17_spill]]  ;;  %s2391_s22 = sld [smem:[#allocation15_spill]] }
 0x9f6   : > { %s2392_s16 = sld [smem:[#allocation20_spill]] }
 0x9fb   : > { %p1623_p8 = scmp.ge.s32.totalorder %s2390_s14, 2  ;;  %s1330_s28 = sand.u32 1, %s2391_s22  }
 0x9fc   : > { %p2393_p11 = scmp.ne.s32.totalorder %s2392_s16, 0  ;;  %s1331_s17 = scalar_lea.sflag [#allocation4], %s1330_s28 }
 0x9fe   : > { %p1612_p13 = pnand %p1623_p8, %p2393_p11 }
 0xa00   : > { %1877 = dma.done.wait (!%p1612_p13), %s1331_s17, 128  }
 0xa01   : > { %1879 = vsyncadd (!%p1612_p13), %s1331_s17, 4294967168  ;;  %s2394_s28 = sld [smem:[#allocation18_spill]]  ;;  %s2395_s19 = sld [smem:[#allocation16_spill]] }
 0xa02   : > { %s2396_s27 = sld [smem:[#allocation19_spill]]  ;;  %s2397_s25 = smov %s1886_s26 }
 0xa07   : > { %p26_p1 = scmp.ge.s32.totalorder %s2394_s28, 4   ;;  %s2398_s26 = smov %s2395_s19 }
 0xa09   :  { %28 = sbr.rel (!%p26_p1) target bundleno = 8 (0x8), region = 124 }
 0xa10   :  { %1336 = vsyncpa [#allocation3], 1 }
 0xa11   :  { %1338 = vsyncpa [#allocation3 + $0x1], 1 }
 0xa12   :  { %1339 = vsyncpa [#allocation6], 1 }
 0xa13   :  { %1340 = vsyncpa [#allocation9], 1 }
 0xa14   :  { %1341 = vsyncpa [#allocation4], 1 }
 0xa15   :  { %1343 = vsyncpa [#allocation4 + $0x1], 1 }

</bundles_post_ra>
